<compile_context>
chip_gen: v5e
topology: v5e:2x2
jax: 0.10.0
libtpu: 0.0.40
codegen_flags: <defaults>
</compile_context>

<pallas_src>
import numpy as np
import jax
import jax.numpy as jnp
from jax import lax
from jax.experimental import pallas as pl
from jax.experimental.pallas import tpu as pltpu

NEG_SLOPE = 0.1
BN_EPS = 1e-5
VMEM_LIMIT = 32 * 1024 * 1024   # fits v5e / v6e / v7x scoped-VMEM budgets
ROWS_TARGET = 512               # target sublane rows per grid step (HBM roofline)


def _leaky(x):
    return jnp.where(x >= 0, x, NEG_SLOPE * x)


def _round_up(v, m):
    return ((v + m - 1) // m) * m


def _pad_axis0(a, n_pad):
    if a.shape[0] == n_pad:
        return a
    pads = [(0, n_pad - a.shape[0])] + [(0, 0)] * (a.ndim - 1)
    return jnp.pad(a, pads)


# ---------------------------------------------------------------------------
# Pass 1: conv1 + bias + leaky_relu (B images per grid step, lane-dense),
# plus per-image partial sums (sum y, sum y^2) per channel for SE / BN.
# ---------------------------------------------------------------------------
def _make_conv_kernel(B, H, OH, K, stride, WCin, OWCp):
    def kernel(x_ref, wb_ref, bias_ref, fold_ref, y_ref, sums_ref):
        bias = bias_ref[...]                           # [1, OWCp]  f32
        fold = fold_ref[...]                           # [OWCp, CF] f32
        # TODO(synk): for large B a lax.fori_loop with dynamic ref indexing
        # would bound live ranges; B is small here, static unroll is fine.
        for b in range(B):
            xb = x_ref[b]                              # [H, WCin] bf16, full tile
            acc = jnp.zeros((OH, OWCp), jnp.float32)
            for kh in range(K):                        # static unroll, K <= 3
                if stride == 1:
                    # bf16 x bf16 MXU matmul with f32 accumulation over the
                    # full H rows, then shift-select the OH output rows of the
                    # f32 result (keeps the packed bf16 input unsliced).
                    # TODO(synk): folding the K taps into one [*, K*WCin]
                    # contraction (deeper MXU use on v6e/v7x) needs a lane-axis
                    # concat at non-128 offsets; kept as K dots for robustness.
                    z = jnp.dot(xb, wb_ref[kh],
                                preferred_element_type=jnp.float32)  # [H, OWCp]
                    acc = acc + lax.slice(z, (kh, 0), (kh + OH, OWCp))
                else:
                    # TODO(synk): stride>1 path slices the packed input per tap
                    # (strided sublane slice); not exercised by the demo.
                    rows = lax.slice(xb, (kh, 0),
                                     (kh + (OH - 1) * stride + 1, WCin),
                                     (stride, 1))
                    acc = acc + jnp.dot(rows, wb_ref[kh],
                                        preferred_element_type=jnp.float32)
            acc = acc + bias
            y = _leaky(acc)                            # F.leaky_relu(., 0.1)
            y_ref[b] = y.astype(y_ref.dtype)           # bf16, full-lane store

            # Per-image partial sums of y and y^2 per channel (SE pooling and
            # BN batch statistics).  fold has the tiled identity pattern, so
            # the per-channel reduction over the packed lane axis is one tiny
            # matmul; its 128-wide output makes the sums store unmasked too.
            rs = jnp.sum(y, axis=0, keepdims=True)     # [1, OWCp]
            rq = jnp.sum(y * y, axis=0, keepdims=True)
            sums_ref[b] = jnp.dot(jnp.concatenate([rs, rq], axis=0), fold,
                                  preferred_element_type=jnp.float32)  # [2, CF]
    return kernel


# ---------------------------------------------------------------------------
# Pass 3: out = A*y + B (+ identity skip), fully parallel, lane-dense.
# ---------------------------------------------------------------------------
def _make_affine_kernel(B, apply_skip):
    if apply_skip:
        def kernel(y_ref, a_ref, sh_ref, x_ref, o_ref):
            shift = sh_ref[0]                          # [1, OWCp]
            for i in range(B):
                o_ref[i] = (y_ref[i].astype(jnp.float32) * a_ref[i]
                            + shift + x_ref[i])
    else:
        def kernel(y_ref, a_ref, sh_ref, o_ref):
            shift = sh_ref[0]
            for i in range(B):
                o_ref[i] = y_ref[i].astype(jnp.float32) * a_ref[i] + shift
    return kernel


def funky_conv_block(x_nchw, params, *, kernel_size, stride, id_skip,
                     squeeze_excite_ratio):
    """Pallas implementation of FunkyConvBlock.forward (NCHW in / NCHW out)."""
    N, Cin, H, W = x_nchw.shape
    K = kernel_size
    w1 = params["conv1_w"]                             # [K, K, Cin, Cout] (HWIO)
    Cout = w1.shape[-1]
    has_se = squeeze_excite_ratio is not None and 0 < squeeze_excite_ratio <= 1
    assert has_se, "demo config always enables squeeze-excite"

    OH = (H - K) // stride + 1
    OW = (W - K) // stride + 1
    OHW = OH * OW
    WCin = W * Cin
    OWC = OW * Cout
    OWCp = _round_up(OWC, 128)                         # lane-dense (unmasked vst)
    CF = _round_up(Cout, 128)                          # padded sums lane width
    # id-skip is only shape-valid when the VALID conv preserves spatial dims
    # (requires K == 1 in addition to stride == 1 for this unpadded conv).
    apply_skip = (bool(id_skip) and stride == 1 and Cin == Cout
                  and OH == H and OW == W)
    f32, bf16 = jnp.float32, jnp.bfloat16

    # ---- image-block sizing (amortise per-step overhead, keep 2 TC busy) ---
    B = max(1, min(N, ROWS_TARGET // max(OH, 1)))
    if N >= 2:
        B = min(B, -(-N // 2))        # keep >= 2 "parallel" grid steps (v7x)
    G = -(-N // B)
    N_pad = G * B

    # ---- layout prep (tiny vs. the activation passes) ----------------------
    # TODO(synk): a fused-block API taking/returning the packed [N,H,W*C]
    # layout would drop these NCHW<->packed transposes (two extra HBM passes).
    x_packed = jnp.transpose(x_nchw.astype(f32), (0, 2, 3, 1)).reshape(N, H, WCin)
    x_bf16 = _pad_axis0(x_packed, N_pad).astype(bf16)  # bf16 MXU operand stream

    # Banded row-matmul weight: wb[kh, iw*Cin+ci, ow*Cout+c] =
    #   w1[kh, iw - ow*stride, ci, c]  if 0 <= iw - ow*stride < K else 0.
    sel = np.zeros((K, W, OW), np.float32)
    for kw in range(K):
        for ow in range(OW):
            sel[kw, ow * stride + kw, ow] = 1.0
    w_band = jnp.einsum("xio,hxcd->hicod", jnp.asarray(sel),
                        w1.astype(f32)).reshape(K, WCin, OWC)
    w_band = jnp.pad(w_band, ((0, 0), (0, 0), (0, OWCp - OWC))).astype(bf16)
    # TODO(synk): for very large W*Cin / OW*Cout on v7x (64 MiB VMEM), tile
    # w_band columns with an extra grid axis and single-buffer its BlockSpec.
    bias_band = jnp.pad(jnp.tile(params["conv1_b"].astype(f32), OW),
                        (0, OWCp - OWC)).reshape(1, OWCp)
    fold_np = np.zeros((OWCp, CF), np.float32)
    fold_np[np.arange(OWC), np.tile(np.arange(Cout), OW)] = 1.0
    chan_fold = jnp.asarray(fold_np)

    # ---- pass 1: conv + bias + leaky (+ per-image sums), "parallel" grid ----
    conv_kernel = _make_conv_kernel(B, H, OH, K, stride, WCin, OWCp)
    y_dense, sums = pl.pallas_call(
        conv_kernel,
        out_shape=(jax.ShapeDtypeStruct((N_pad, OH, OWCp), bf16),
                   jax.ShapeDtypeStruct((N_pad, 2, CF), f32)),
        grid=(G,),
        in_specs=[
            pl.BlockSpec((B, H, WCin), lambda g: (g, 0, 0)),
            pl.BlockSpec((K, WCin, OWCp), lambda g: (0, 0, 0)),
            pl.BlockSpec((1, OWCp), lambda g: (0, 0)),
            pl.BlockSpec((OWCp, CF), lambda g: (0, 0)),
        ],
        out_specs=(
            pl.BlockSpec((B, OH, OWCp), lambda g: (g, 0, 0)),
            pl.BlockSpec((B, 2, CF), lambda g: (g, 0, 0)),
        ),
        compiler_params=pltpu.CompilerParams(
            dimension_semantics=("parallel",),
            vmem_limit_bytes=VMEM_LIMIT),
        cost_estimate=pl.CostEstimate(
            flops=int(2 * N_pad * K * H * WCin * OWCp
                      + 2 * N_pad * 2 * OWCp * CF),
            transcendentals=0,
            bytes_accessed=int(2 * N_pad * H * WCin + 2 * K * WCin * OWCp
                               + 4 * OWCp * (CF + 1)
                               + 2 * N_pad * OH * OWCp + 4 * N_pad * 2 * CF)),
    )(x_bf16, w_band, bias_band, chan_fold)

    # ---- "pass 2" in plain JAX: SE MLP + BN batch stats -> affine A, B -----
    # (~N*Cout elements of work; not worth a kernel launch + HBM round trip.)
    s1 = sums[:N, 0, :Cout]                            # sum(y)   per (n, c)
    s2 = sums[:N, 1, :Cout]                            # sum(y^2) per (n, c)
    pooled = s1 * (1.0 / OHW)                          # adaptive_avg_pool2d(.,1)
    h = _leaky(pooled @ params["se_reduce_w"].astype(f32)
               + params["se_reduce_b"].astype(f32))
    e = jax.nn.sigmoid(h @ params["se_expand_w"].astype(f32)
                       + params["se_expand_b"].astype(f32))   # [N, Cout] SE scale
    # BN training-mode batch stats of the SE-scaled activations (biased var),
    # factored through the per-image partial sums.
    # TODO(synk): single-pass E[y^2]-mean^2 can lose precision if |mean|>>std.
    inv_total = 1.0 / (N * OHW)
    mu = jnp.sum(e * s1, axis=0) * inv_total                   # [Cout]
    ex2 = jnp.sum(e * e * s2, axis=0) * inv_total
    var = jnp.maximum(ex2 - mu * mu, 0.0)
    gr = params["bn_gamma"].astype(f32) * lax.rsqrt(var + BN_EPS)
    A = e * gr[None, :]                                        # per-(n, c) scale
    Bc = params["bn_beta"].astype(f32) - mu * gr               # per-channel shift
    a_rows = jnp.pad(jnp.tile(A, (1, OW)),
                     ((0, N_pad - N), (0, OWCp - OWC))).reshape(N_pad, 1, OWCp)
    b_row = jnp.pad(jnp.tile(Bc, OW), (0, OWCp - OWC)).reshape(1, 1, OWCp)

    # ---- pass 3: apply SE*BN affine (+ id-skip), fully parallel -------------
    affine_kernel = _make_affine_kernel(B, apply_skip)
    in_specs = [
        pl.BlockSpec((B, OH, OWCp), lambda g: (g, 0, 0)),
        pl.BlockSpec((B, 1, OWCp), lambda g: (g, 0, 0)),
        pl.BlockSpec((1, 1, OWCp), lambda g: (0, 0, 0)),
    ]
    operands = [y_dense, a_rows, b_row]
    if apply_skip:
        x_skip = jnp.pad(_pad_axis0(x_packed, N_pad),
                         ((0, 0), (0, 0), (0, OWCp - WCin)))
        operands.append(x_skip)
        in_specs.append(pl.BlockSpec((B, H, OWCp), lambda g: (g, 0, 0)))

    out_dense = pl.pallas_call(
        affine_kernel,
        out_shape=jax.ShapeDtypeStruct((N_pad, OH, OWCp), f32),
        grid=(G,),
        in_specs=in_specs,
        out_specs=pl.BlockSpec((B, OH, OWCp), lambda g: (g, 0, 0)),
        compiler_params=pltpu.CompilerParams(
            dimension_semantics=("parallel",),
            vmem_limit_bytes=VMEM_LIMIT),
        cost_estimate=pl.CostEstimate(
            flops=int((2 + int(apply_skip)) * N_pad * OH * OWCp),
            transcendentals=0,
            bytes_accessed=int(6 * N_pad * OH * OWCp + 4 * N_pad * OWCp
                               + 4 * OWCp
                               + int(apply_skip) * 4 * N_pad * H * OWCp)),
    )(*operands)

    out = out_dense[:N, :, :OWC].reshape(N, OH, OW, Cout)
    return jnp.transpose(out, (0, 3, 1, 2))                    # back to NCHW


# ---------------------------------------------------------------------------
# Pure-JAX reference mirroring the PyTorch forward semantics (f32).
# ---------------------------------------------------------------------------
def funky_conv_block_ref(x_nchw, params, *, kernel_size, stride, id_skip,
                         squeeze_excite_ratio):
    N, Cin, H, W = x_nchw.shape
    K = kernel_size
    w1 = params["conv1_w"]
    Cout = w1.shape[-1]
    OH = (H - K) // stride + 1
    OW = (W - K) // stride + 1
    apply_skip = (bool(id_skip) and stride == 1 and Cin == Cout
                  and OH == H and OW == W)

    x = jnp.transpose(x_nchw, (0, 2, 3, 1)).astype(jnp.float32)   # NHWC
    y = lax.conv_general_dilated(
        x, w1, (stride, stride), "VALID",
        dimension_numbers=("NHWC", "HWIO", "NHWC"),
        precision=lax.Precision.HIGHEST)
    y = y + params["conv1_b"][None, None, None, :]
    y = _leaky(y)

    pooled = jnp.mean(y, axis=(1, 2))                              # [N, Cout]
    s = _leaky(pooled @ params["se_reduce_w"] + params["se_reduce_b"])
    s = jax.nn.sigmoid(s @ params["se_expand_w"] + params["se_expand_b"])
    y = y * s[:, None, None, :]

    mu = jnp.mean(y, axis=(0, 1, 2))
    var = jnp.mean((y - mu) ** 2, axis=(0, 1, 2))
    y = params["bn_gamma"] * (y - mu) / jnp.sqrt(var + BN_EPS) + params["bn_beta"]

    if apply_skip:
        # TODO(synk): drop_connect uses torch RNG (training-only Bernoulli);
        # drop_connect_rate=None here so it is a no-op, as in the default call.
        y = y + x
    return jnp.transpose(y, (0, 3, 1, 2))


def init_params(key, Cin, Cout, K, squeeze_excite_ratio):
    """Deterministic synthetic parameters (shapes from the module __init__)."""
    Csq = max(1, int(Cin * squeeze_excite_ratio))
    ks = jax.random.split(key, 6)
    return {
        "conv1_w": 0.1 * jax.random.normal(ks[0], (K, K, Cin, Cout), jnp.float32),
        "conv1_b": 0.1 * jax.random.normal(ks[1], (Cout,), jnp.float32),
        "se_reduce_w": 0.2 * jax.random.normal(ks[2], (Cout, Csq), jnp.float32),
        "se_reduce_b": 0.1 * jax.random.normal(ks[3], (Csq,), jnp.float32),
        "se_expand_w": 0.2 * jax.random.normal(ks[4], (Csq, Cout), jnp.float32),
        "se_expand_b": 0.1 * jax.random.normal(ks[5], (Cout,), jnp.float32),
        "bn_gamma": jnp.linspace(0.8, 1.2, Cout, dtype=jnp.float32),
        "bn_beta": jnp.linspace(-0.1, 0.1, Cout, dtype=jnp.float32),
    }


if __name__ == "__main__":
    key = jax.random.PRNGKey(0)
    kx1, kx2, kp1, kp2 = jax.random.split(key, 4)

    run = jax.jit(funky_conv_block,
                  static_argnames=("kernel_size", "stride", "id_skip",
                                   "squeeze_excite_ratio"))

    # Tolerances are 2e-2 (vs. an f32 reference) because x/w operands and the
    # y intermediate are bf16 (f32 accumulation), per the performance review.
    TOL = dict(rtol=2e-2, atol=2e-2)

    # Config 1: kernel_size=3, Cin(4) != Cout(8) -> id-skip branch not taken.
    x1 = jax.random.normal(kx1, (2, 4, 16, 16), jnp.float32)
    p1 = init_params(kp1, Cin=4, Cout=8, K=3, squeeze_excite_ratio=0.25)
    out1 = jax.block_until_ready(
        run(x1, p1, kernel_size=3, stride=1, id_skip=True,
            squeeze_excite_ratio=0.25))
    ref1 = funky_conv_block_ref(x1, p1, kernel_size=3, stride=1, id_skip=True,
                                squeeze_excite_ratio=0.25)
    np.testing.assert_allclose(np.asarray(out1), np.asarray(ref1), **TOL)

    # Config 2: kernel_size=1, Cin == Cout == 8 -> identity skip is applied.
    x2 = jax.random.normal(kx2, (2, 8, 16, 16), jnp.float32)
    p2 = init_params(kp2, Cin=8, Cout=8, K=1, squeeze_excite_ratio=0.25)
    out2 = jax.block_until_ready(
        run(x2, p2, kernel_size=1, stride=1, id_skip=True,
            squeeze_excite_ratio=0.25))
    ref2 = funky_conv_block_ref(x2, p2, kernel_size=1, stride=1, id_skip=True,
                                squeeze_excite_ratio=0.25)
    np.testing.assert_allclose(np.asarray(out2), np.asarray(ref2), **TOL)

    print("KERNEL_OK")
</pallas_src>

<mosaic_0001>
module attributes {stable_mosaic.version = 11 : i64} {
  func.func @kernel(%arg0: i32, %arg1: memref<1x16x64xbf16, #tpu.memory_space<vmem>>, %arg2: memref<3x64x128xbf16, #tpu.memory_space<vmem>>, %arg3: memref<1x128xf32, #tpu.memory_space<vmem>>, %arg4: memref<128x128xf32, #tpu.memory_space<vmem>>, %arg5: memref<1x14x128xbf16, #tpu.memory_space<vmem>>, %arg6: memref<1x2x128xf32, #tpu.memory_space<vmem>>) attributes {dimension_semantics = [#tpu.dimension_semantics<parallel>], iteration_bounds = array<i64: 2>, scalar_prefetch = 0 : i64, scratch_operands = 0 : i64, tpu.core_type = #tpu.core_type<tc>, window_params = [{transform_indices = @transform_0, window_bounds = array<i64: 1, 16, 64>}, {pipeline_mode = #tpu.pipeline_mode<synchronous>, transform_indices = @transform_1, window_bounds = array<i64: 3, 64, 128>}, {pipeline_mode = #tpu.pipeline_mode<synchronous>, transform_indices = @transform_2, window_bounds = array<i64: 1, 128>}, {pipeline_mode = #tpu.pipeline_mode<synchronous>, transform_indices = @transform_3, window_bounds = array<i64: 128, 128>}, {transform_indices = @transform_4, window_bounds = array<i64: 1, 14, 128>}, {transform_indices = @transform_5, window_bounds = array<i64: 1, 2, 128>}]} {
    %c0 = arith.constant 0 : index
    %c0_0 = arith.constant 0 : index
    %0 = vector.load %arg3[%c0, %c0_0] : memref<1x128xf32, #tpu.memory_space<vmem>>, vector<1x128xf32>
    %c0_1 = arith.constant 0 : index
    %c0_2 = arith.constant 0 : index
    %1 = vector.load %arg4[%c0_1, %c0_2] : memref<128x128xf32, #tpu.memory_space<vmem>>, vector<128x128xf32>
    %c0_3 = arith.constant 0 : index
    %c0_4 = arith.constant 0 : index
    %c0_5 = arith.constant 0 : index
    %2 = vector.load %arg1[%c0_3, %c0_4, %c0_5] : memref<1x16x64xbf16, #tpu.memory_space<vmem>>, vector<1x16x64xbf16>
    %3 = vector.shape_cast %2 : vector<1x16x64xbf16> to vector<16x64xbf16>
    %cst = arith.constant 0.000000e+00 : f32
    %4 = vector.broadcast %cst : f32 to vector<14x128xf32>
    %c0_6 = arith.constant 0 : index
    %c0_7 = arith.constant 0 : index
    %c0_8 = arith.constant 0 : index
    %5 = vector.load %arg2[%c0_6, %c0_7, %c0_8] : memref<3x64x128xbf16, #tpu.memory_space<vmem>>, vector<1x64x128xbf16>
    %6 = vector.shape_cast %5 : vector<1x64x128xbf16> to vector<64x128xbf16>
    %cst_9 = arith.constant dense<0.000000e+00> : vector<16x128xf32>
    %7 = tpu.matmul %3, %6, %cst_9 {dimension_numbers = #tpu.dot_dimension_numbers<[1], [0], [0], [1], [0, 0, 1, 1], [], []>} : vector<16x64xbf16>, vector<64x128xbf16>, vector<16x128xf32> -> vector<16x128xf32>
    %8 = vector.extract_strided_slice %7 {offsets = [0, 0], sizes = [14, 128], strides = [1, 1]} : vector<16x128xf32> to vector<14x128xf32>
    %9 = arith.addf %4, %8 : vector<14x128xf32>
    %c1 = arith.constant 1 : index
    %c0_10 = arith.constant 0 : index
    %c0_11 = arith.constant 0 : index
    %10 = vector.load %arg2[%c1, %c0_10, %c0_11] : memref<3x64x128xbf16, #tpu.memory_space<vmem>>, vector<1x64x128xbf16>
    %11 = vector.shape_cast %10 : vector<1x64x128xbf16> to vector<64x128xbf16>
    %cst_12 = arith.constant dense<0.000000e+00> : vector<16x128xf32>
    %12 = tpu.matmul %3, %11, %cst_12 {dimension_numbers = #tpu.dot_dimension_numbers<[1], [0], [0], [1], [0, 0, 1, 1], [], []>} : vector<16x64xbf16>, vector<64x128xbf16>, vector<16x128xf32> -> vector<16x128xf32>
    %13 = vector.extract_strided_slice %12 {offsets = [1, 0], sizes = [14, 128], strides = [1, 1]} : vector<16x128xf32> to vector<14x128xf32>
    %14 = arith.addf %9, %13 : vector<14x128xf32>
    %c2 = arith.constant 2 : index
    %c0_13 = arith.constant 0 : index
    %c0_14 = arith.constant 0 : index
    %15 = vector.load %arg2[%c2, %c0_13, %c0_14] : memref<3x64x128xbf16, #tpu.memory_space<vmem>>, vector<1x64x128xbf16>
    %16 = vector.shape_cast %15 : vector<1x64x128xbf16> to vector<64x128xbf16>
    %cst_15 = arith.constant dense<0.000000e+00> : vector<16x128xf32>
    %17 = tpu.matmul %3, %16, %cst_15 {dimension_numbers = #tpu.dot_dimension_numbers<[1], [0], [0], [1], [0, 0, 1, 1], [], []>} : vector<16x64xbf16>, vector<64x128xbf16>, vector<16x128xf32> -> vector<16x128xf32>
    %18 = vector.extract_strided_slice %17 {offsets = [2, 0], sizes = [14, 128], strides = [1, 1]} : vector<16x128xf32> to vector<14x128xf32>
    %19 = arith.addf %14, %18 : vector<14x128xf32>
    %20 = vector.broadcast %0 : vector<1x128xf32> to vector<14x128xf32>
    %21 = arith.addf %19, %20 : vector<14x128xf32>
    %cst_16 = arith.constant 0.000000e+00 : f32
    %22 = vector.broadcast %cst_16 : f32 to vector<14x128xf32>
    %23 = arith.cmpf oge, %21, %22 : vector<14x128xf32>
    %cst_17 = arith.constant 1.000000e-01 : f32
    %24 = vector.broadcast %cst_17 : f32 to vector<14x128xf32>
    %25 = arith.mulf %24, %21 : vector<14x128xf32>
    %26 = arith.select %23, %21, %25 : vector<14x128xi1>, vector<14x128xf32>
    %27 = arith.truncf %26 : vector<14x128xf32> to vector<14x128xbf16>
    %c0_18 = arith.constant 0 : index
    %c0_19 = arith.constant 0 : index
    %c0_20 = arith.constant 0 : index
    %28 = vector.load %arg5[%c0_18, %c0_19, %c0_20] : memref<1x14x128xbf16, #tpu.memory_space<vmem>>, vector<1x14x128xbf16>
    %29 = vector.shape_cast %28 : vector<1x14x128xbf16> to vector<14x128xbf16>
    %30 = vector.shape_cast %27 : vector<14x128xbf16> to vector<1x14x128xbf16>
    tpu.vector_store %arg5[%c0_18, %c0_19, %c0_20], %30 {strides = array<i32>} : memref<1x14x128xbf16, #tpu.memory_space<vmem>>, vector<1x14x128xbf16>,
    %cst_21 = arith.constant dense<0.000000e+00> : vector<128xf32>
    %31 = vector.multi_reduction <add>, %26, %cst_21 [0] : vector<14x128xf32> to vector<128xf32>
    %32 = vector.shape_cast %31 : vector<128xf32> to vector<1x128xf32>
    %33 = arith.mulf %26, %26 : vector<14x128xf32>
    %cst_22 = arith.constant dense<0.000000e+00> : vector<128xf32>
    %34 = vector.multi_reduction <add>, %33, %cst_22 [0] : vector<14x128xf32> to vector<128xf32>
    %35 = vector.shape_cast %34 : vector<128xf32> to vector<1x128xf32>
    %36 = tpu.concatenate %32, %35 in 0 : vector<1x128xf32>, vector<1x128xf32> -> vector<2x128xf32>
    %cst_23 = arith.constant dense<0.000000e+00> : vector<2x128xf32>
    %37 = tpu.matmul %36, %1, %cst_23 {dimension_numbers = #tpu.dot_dimension_numbers<[1], [0], [0], [1], [0, 0, 1, 1], [], []>} : vector<2x128xf32>, vector<128x128xf32>, vector<2x128xf32> -> vector<2x128xf32>
    %c0_24 = arith.constant 0 : index
    %c0_25 = arith.constant 0 : index
    %c0_26 = arith.constant 0 : index
    %38 = vector.load %arg6[%c0_24, %c0_25, %c0_26] : memref<1x2x128xf32, #tpu.memory_space<vmem>>, vector<1x2x128xf32>
    %39 = vector.shape_cast %38 : vector<1x2x128xf32> to vector<2x128xf32>
    %40 = vector.shape_cast %37 : vector<2x128xf32> to vector<1x2x128xf32>
    tpu.vector_store %arg6[%c0_24, %c0_25, %c0_26], %40 {strides = array<i32>} : memref<1x2x128xf32, #tpu.memory_space<vmem>>, vector<1x2x128xf32>,
    return
  }
  func.func @transform_0(%arg0: i32) -> (i32, i32, i32) {
    %c0_i32 = arith.constant 0 : i32
    %c0_i32_0 = arith.constant 0 : i32
    %c0_i32_1 = arith.constant 0 : i32
    return %arg0, %c0_i32, %c0_i32_0 : i32, i32, i32
  }
  func.func @transform_1(%arg0: i32) -> (i32, i32, i32) {
    %c0_i32 = arith.constant 0 : i32
    %c0_i32_0 = arith.constant 0 : i32
    %c0_i32_1 = arith.constant 0 : i32
    %c0_i32_2 = arith.constant 0 : i32
    return %c0_i32, %c0_i32_0, %c0_i32_1 : i32, i32, i32
  }
  func.func @transform_2(%arg0: i32) -> (i32, i32) {
    %c0_i32 = arith.constant 0 : i32
    %c0_i32_0 = arith.constant 0 : i32
    %c0_i32_1 = arith.constant 0 : i32
    return %c0_i32, %c0_i32_0 : i32, i32
  }
  func.func @transform_3(%arg0: i32) -> (i32, i32) {
    %c0_i32 = arith.constant 0 : i32
    %c0_i32_0 = arith.constant 0 : i32
    %c0_i32_1 = arith.constant 0 : i32
    return %c0_i32, %c0_i32_0 : i32, i32
  }
  func.func @transform_4(%arg0: i32) -> (i32, i32, i32) {
    %c0_i32 = arith.constant 0 : i32
    %c0_i32_0 = arith.constant 0 : i32
    %c0_i32_1 = arith.constant 0 : i32
    return %arg0, %c0_i32, %c0_i32_0 : i32, i32, i32
  }
  func.func @transform_5(%arg0: i32) -> (i32, i32, i32) {
    %c0_i32 = arith.constant 0 : i32
    %c0_i32_0 = arith.constant 0 : i32
    %c0_i32_1 = arith.constant 0 : i32
    return %arg0, %c0_i32, %c0_i32_0 : i32, i32, i32
  }
}

module attributes {stable_mosaic.version = 11 : i64} {
  func.func @kernel(%arg0: i32, %arg1: memref<1x14x128xbf16, #tpu.memory_space<vmem>>, %arg2: memref<1x1x128xf32, #tpu.memory_space<vmem>>, %arg3: memref<1x1x128xf32, #tpu.memory_space<vmem>>, %arg4: memref<1x14x128xf32, #tpu.memory_space<vmem>>) attributes {dimension_semantics = [#tpu.dimension_semantics<parallel>], iteration_bounds = array<i64: 2>, scalar_prefetch = 0 : i64, scratch_operands = 0 : i64, tpu.core_type = #tpu.core_type<tc>, window_params = [{transform_indices = @transform_0, window_bounds = array<i64: 1, 14, 128>}, {transform_indices = @transform_1, window_bounds = array<i64: 1, 1, 128>}, {pipeline_mode = #tpu.pipeline_mode<synchronous>, transform_indices = @transform_2, window_bounds = array<i64: 1, 1, 128>}, {transform_indices = @transform_3, window_bounds = array<i64: 1, 14, 128>}]} {
    %c0 = arith.constant 0 : index
    %c0_0 = arith.constant 0 : index
    %c0_1 = arith.constant 0 : index
    %0 = vector.load %arg3[%c0, %c0_0, %c0_1] : memref<1x1x128xf32, #tpu.memory_space<vmem>>, vector<1x1x128xf32>
    %1 = vector.shape_cast %0 : vector<1x1x128xf32> to vector<1x128xf32>
    %c0_2 = arith.constant 0 : index
    %c0_3 = arith.constant 0 : index
    %c0_4 = arith.constant 0 : index
    %2 = vector.load %arg1[%c0_2, %c0_3, %c0_4] : memref<1x14x128xbf16, #tpu.memory_space<vmem>>, vector<1x14x128xbf16>
    %3 = vector.shape_cast %2 : vector<1x14x128xbf16> to vector<14x128xbf16>
    %4 = arith.extf %3 : vector<14x128xbf16> to vector<14x128xf32>
    %c0_5 = arith.constant 0 : index
    %c0_6 = arith.constant 0 : index
    %c0_7 = arith.constant 0 : index
    %5 = vector.load %arg2[%c0_5, %c0_6, %c0_7] : memref<1x1x128xf32, #tpu.memory_space<vmem>>, vector<1x1x128xf32>
    %6 = vector.shape_cast %5 : vector<1x1x128xf32> to vector<1x128xf32>
    %7 = vector.broadcast %6 : vector<1x128xf32> to vector<14x128xf32>
    %8 = arith.mulf %4, %7 : vector<14x128xf32>
    %9 = vector.broadcast %1 : vector<1x128xf32> to vector<14x128xf32>
    %10 = arith.addf %8, %9 : vector<14x128xf32>
    %c0_8 = arith.constant 0 : index
    %c0_9 = arith.constant 0 : index
    %c0_10 = arith.constant 0 : index
    %11 = vector.load %arg4[%c0_8, %c0_9, %c0_10] : memref<1x14x128xf32, #tpu.memory_space<vmem>>, vector<1x14x128xf32>
    %12 = vector.shape_cast %11 : vector<1x14x128xf32> to vector<14x128xf32>
    %13 = vector.shape_cast %10 : vector<14x128xf32> to vector<1x14x128xf32>
    tpu.vector_store %arg4[%c0_8, %c0_9, %c0_10], %13 {strides = array<i32>} : memref<1x14x128xf32, #tpu.memory_space<vmem>>, vector<1x14x128xf32>,
    return
  }
  func.func @transform_0(%arg0: i32) -> (i32, i32, i32) {
    %c0_i32 = arith.constant 0 : i32
    %c0_i32_0 = arith.constant 0 : i32
    %c0_i32_1 = arith.constant 0 : i32
    return %arg0, %c0_i32, %c0_i32_0 : i32, i32, i32
  }
  func.func @transform_1(%arg0: i32) -> (i32, i32, i32) {
    %c0_i32 = arith.constant 0 : i32
    %c0_i32_0 = arith.constant 0 : i32
    %c0_i32_1 = arith.constant 0 : i32
    return %arg0, %c0_i32, %c0_i32_0 : i32, i32, i32
  }
  func.func @transform_2(%arg0: i32) -> (i32, i32, i32) {
    %c0_i32 = arith.constant 0 : i32
    %c0_i32_0 = arith.constant 0 : i32
    %c0_i32_1 = arith.constant 0 : i32
    %c0_i32_2 = arith.constant 0 : i32
    return %c0_i32, %c0_i32_0, %c0_i32_1 : i32, i32, i32
  }
  func.func @transform_3(%arg0: i32) -> (i32, i32, i32) {
    %c0_i32 = arith.constant 0 : i32
    %c0_i32_0 = arith.constant 0 : i32
    %c0_i32_1 = arith.constant 0 : i32
    return %arg0, %c0_i32, %c0_i32_0 : i32, i32, i32
  }
}

</mosaic_0001>

<bundles_post_ra>
// kernel: tile.18
= control target key start
LH: loop header
LB: loop body
LE: loop exit
PB: predicated region body
PF: predicated region fallthrough
CT: control target
= control target key end

     0   :  { %s28_s0 = inlined_call_operand.vmem [shape: f32[8], index: 0, kind: input, shape index: {}]   ;;  %s29_s1 = inlined_call_operand.vmem [shape: f32[14,8], index: 1, kind: output, shape index: {}]  }
   0x1   :  { %v4_v0 = vld [vmem:[%s28_s0] ss:$0 sm:$0xff] }
   0x2   :  { %5 = vst [vmem:[%s29_s1] sm:$0xff] %v4_v0 }
   0x3   :  { %8 = vst [vmem:[%s29_s1 + $0x8] sm:$0xff] %v4_v0 }

// kernel: tile.19
= control target key start
LH: loop header
LB: loop body
LE: loop exit
PB: predicated region body
PF: predicated region fallthrough
CT: control target
= control target key end

     0   :  { %s115_s10 = smov 104   ;;  %s116_s11 = smov 88   ;;  %vm3_vm0 = vcmask 64512   ;;  %vm9_vm1 = vcmask 917312   ;;  %vm15_vm2 = vcmask 851712   ;;  %vm21_vm3 = vcmask 786112   ;;  %s183_s0 = inlined_call_operand.vmem [shape: f32[14,8], index: 0, kind: input, shape index: {}]   ;;  %s184_s1 = inlined_call_operand.vmem [shape: f32[112], index: 1, kind: output, shape index: {}]  }
   0x1   :  { %v89_v0 = vld [vmem:[%s183_s0 + $0xd] sm:$0x1]   ;;  %v91_v1 = vld [vmem:[%s183_s0 + $0xb] sm:$0x1]   ;;  %v93_v2 = vld [vmem:[%s183_s0 + $0x9] sm:$0x1]  }
   0x2   :  { %7 = vrot.lane.b32.xlu0 %v89_v0, %s115_s10  ;;  %19 = vrot.lane.b32.xlu1 %v91_v1, %s116_s11  ;;  %s117_s14 = smov 72   ;;  %v90_v3 = vld [vmem:[%s183_s0 + $0xc] sm:$0x1]   ;;  %v92_v4 = vld [vmem:[%s183_s0 + $0xa] sm:$0x1]   ;;  %s118_s19 = smov 96  }
   0x3   :  { %31 = vrot.lane.b32.xlu2 %v93_v2, %s117_s14  ;;  %s119_s20 = smov 80   ;;  %v94_v5 = vld [vmem:[%s183_s0 + $0x8] sm:$0x1]   ;;  %s120_s23 = smov 64   ;;  %v95_v6 = vld [vmem:[%s183_s0 + $0x7] sm:$0x1]  }
   0x4   :  { %v96_v7 = vld [vmem:[%s183_s0 + $0x6] sm:$0x1]   ;;  %s121_s28 = smov 56   ;;  %s122_s29 = smov 48   ;;  %v97_v8 = vld [vmem:[%s183_s0 + $0x5] sm:$0x1]  }
   0x5   :  { %s123_s3 = smov 40   ;;  %v98_v9 = vld [vmem:[%s183_s0 + $0x4] sm:$0x1]   ;;  %v99_v10 = vld [vmem:[%s183_s0 + $0x3] sm:$0x1]   ;;  %s124_s8 = smov 32  }
   0x6   :  { %s125_s9 = smov 24   ;;  %v100_v11 = vld [vmem:[%s183_s0 + $0x2] sm:$0x1]   ;;  %s126_s12 = smov 16   ;;  %v101_v12 = vld [vmem:[%s183_s0 + $0x1] sm:$0x1]  }
   0x7   :  { %s127_s15 = smov 8   ;;  %v2_v13 = vld [vmem:[%s183_s0] sm:$0x1]   ;;  %vm27_vm4 = vcmask 720512   ;;  %vm33_vm5 = vcmask 654912   ;;  %vm39_vm6 = vcmask 589312  }
   0x8   :  { %4 = vst.msk [vmem:[#allocation0] sm:$0x1] %vm3_vm0, %v2_v13   ;;  %vm45_vm7 = vcmask 523712   ;;  %vm51_vm8 = vcmask 458112   ;;  %vm57_vm9 = vcmask 392512   ;;  %vm63_vm10 = vcmask 326912  }
   0x9   :  { %vm69_vm11 = vcmask 261312   ;;  %vm75_vm12 = vcmask 195712   ;;  %vm81_vm13 = vcmask 130112  }
   0xa   :  { %13 = vrot.lane.b32.xlu0 %v90_v3, %s118_s19  ;;  %25 = vrot.lane.b32.xlu1 %v92_v4, %s119_s20 }
   0xb   :  { %37 = vrot.lane.b32.xlu2 %v94_v5, %s120_s23 }
  0x12   :  { %43 = vrot.lane.b32.xlu0 %v95_v6, %s121_s28  ;;  %49 = vrot.lane.b32.xlu1 %v96_v7, %s122_s29 }
  0x13   :  { %55 = vrot.lane.b32.xlu2 %v97_v8, %s123_s3 }
  0x1a   :  { %61 = vrot.lane.b32.xlu0 %v98_v9, %s124_s8  ;;  %67 = vrot.lane.b32.xlu1 %v99_v10, %s125_s9 }
  0x1b   :  { %73 = vrot.lane.b32.xlu2 %v100_v11, %s126_s12 }
  0x22   :  { %79 = vrot.lane.b32.xlu0 %v101_v12, %s127_s15 }
  0x5d   :  { %v32_v14 = vpop.permute.xlu2 %31  }
  0x65   :  { %v38_v15 = vpop.permute.xlu2 %37  }
  0x6d   :  { %v56_v16 = vpop.permute.xlu2 %55  }
  0x74   :  { %v8_v17 = vpop.permute.xlu0 %7   ;;  %v20_v18 = vpop.permute.xlu1 %19  }
  0x75   :  { %10 = vst.msk [vmem:[#allocation0] sm:$0x1] %vm9_vm1, %v8_v17   ;;  %v74_v19 = vpop.permute.xlu2 %73  }
  0x7c   :  { %v14_v20 = vpop.permute.xlu0 %13   ;;  %v26_v21 = vpop.permute.xlu1 %25  }
  0x7d   :  { %16 = vst.msk [vmem:[#allocation0] sm:$0x1] %vm15_vm2, %v14_v20  }
  0x7e   :  { %22 = vst.msk [vmem:[#allocation0] sm:$0x1] %vm21_vm3, %v20_v18  }
  0x7f   :  { %28 = vst.msk [vmem:[#allocation0] sm:$0x1] %vm27_vm4, %v26_v21  }
  0x80   :  { %34 = vst.msk [vmem:[#allocation0] sm:$0x1] %vm33_vm5, %v32_v14  }
  0x81   :  { %40 = vst.msk [vmem:[#allocation0] sm:$0x1] %vm39_vm6, %v38_v15  }
  0x84   :  { %v44_v22 = vpop.permute.xlu0 %43   ;;  %v50_v23 = vpop.permute.xlu1 %49  }
  0x85   :  { %46 = vst.msk [vmem:[#allocation0] sm:$0x1] %vm45_vm7, %v44_v22  }
  0x86   :  { %52 = vst.msk [vmem:[#allocation0] sm:$0x1] %vm51_vm8, %v50_v23  }
  0x87   :  { %58 = vst.msk [vmem:[#allocation0] sm:$0x1] %vm57_vm9, %v56_v16  }
  0x8c   :  { %v62_v24 = vpop.permute.xlu0 %61   ;;  %v68_v25 = vpop.permute.xlu1 %67  }
  0x8d   :  { %64 = vst.msk [vmem:[#allocation0] sm:$0x1] %vm63_vm10, %v62_v24  }
  0x8e   :  { %70 = vst.msk [vmem:[#allocation0] sm:$0x1] %vm69_vm11, %v68_v25  }
  0x8f   :  { %76 = vst.msk [vmem:[#allocation0] sm:$0x1] %vm75_vm12, %v74_v19  }
  0x94   :  { %v80_v26 = vpop.permute.xlu0 %79  }
  0x95   :  { %82 = vst.msk [vmem:[#allocation0] sm:$0x1] %vm81_vm13, %v80_v26  }
  0x9c   :  { %v85_v27 = vld [vmem:[#allocation0] sm:$0x1] }
  0x9d   :  { %88 = vst [vmem:[%s184_s1] sm:$0x1] %v85_v27 }

// kernel: tile.24
= control target key start
LH: loop header
LB: loop body
LE: loop exit
PB: predicated region body
PF: predicated region fallthrough
CT: control target
= control target key end

     0   :  { %s7_s6 = smov 3  ;;  %s21_s9 = smov 3  ;;  %vm4_vm0 = vcmask 64512   ;;  %vm11_vm1 = vcmask 917312   ;;  %vm18_vm2 = vcmask 851712   ;;  %vm25_vm3 = vcmask 786112   ;;  %s197_s0 = inlined_call_operand.vmem [shape: f32[2,14,8], index: 0, kind: input, shape index: {}]   ;;  %s198_s1 = inlined_call_operand.vmem [shape: f32[2,112], index: 1, kind: output, shape index: {}]  }
   0x1   :  { %v103_v0 = vld [vmem:[%s197_s0 + $0xd] ss:$16 sm:%s7_s6]   ;;  %s129_s10 = smov 104   ;;  %v105_v1 = vld [vmem:[%s197_s0 + $0xb] ss:$16 sm:%s21_s9]   ;;  %s130_s13 = smov 88  }
   0x2   :  { %9 = vrot.lane.b32.xlu0 %v103_v0, %s129_s10  ;;  %23 = vrot.lane.b32.xlu1 %v105_v1, %s130_s13  ;;  %s14_s14 = smov 3  ;;  %s28_s15 = smov 3  ;;  %vm32_vm4 = vcmask 720512   ;;  %vm39_vm5 = vcmask 654912   ;;  %vm46_vm6 = vcmask 589312   ;;  %vm53_vm7 = vcmask 523712  }
   0x3   :  { %v104_v2 = vld [vmem:[%s197_s0 + $0xc] ss:$16 sm:%s14_s14]   ;;  %v106_v3 = vld [vmem:[%s197_s0 + $0xa] ss:$16 sm:%s28_s15]   ;;  %s35_s20 = smov 3  ;;  %s131_s23 = smov 96  }
   0x4   :  { %v107_v4 = vld [vmem:[%s197_s0 + $0x9] ss:$16 sm:%s35_s20]   ;;  %s132_s24 = smov 72   ;;  %s133_s25 = smov 80   ;;  %vm60_vm8 = vcmask 458112   ;;  %vm67_vm9 = vcmask 392512  }
   0x5   :  { %37 = vrot.lane.b32.xlu2 %v107_v4, %s132_s24  ;;  %s49_s26 = smov 3  ;;  %s42_s27 = smov 3  ;;  %vm74_vm10 = vcmask 326912   ;;  %vm81_vm11 = vcmask 261312   ;;  %vm88_vm12 = vcmask 195712   ;;  %vm95_vm13 = vcmask 130112  }
   0x6   :  { %s56_s28 = smov 3  ;;  %v109_v5 = vld [vmem:[%s197_s0 + $0x7] ss:$16 sm:%s49_s26]   ;;  %v108_v6 = vld [vmem:[%s197_s0 + $0x8] ss:$16 sm:%s42_s27]   ;;  %s134_s6 = smov 56  }
   0x7   :  { %v110_v7 = vld [vmem:[%s197_s0 + $0x6] ss:$16 sm:%s56_s28]   ;;  %s135_s7 = smov 64   ;;  %s136_s8 = smov 48  }
   0x8   :  { %s70_s9 = smov 3  ;;  %s63_s10 = smov 3 }
   0x9   :  { %s77_s11 = smov 3  ;;  %v112_v8 = vld [vmem:[%s197_s0 + $0x4] ss:$16 sm:%s70_s9]   ;;  %v111_v9 = vld [vmem:[%s197_s0 + $0x5] ss:$16 sm:%s63_s10]   ;;  %s137_s18 = smov 32  }
   0xa   :  { %16 = vrot.lane.b32.xlu0 %v104_v2, %s131_s23  ;;  %30 = vrot.lane.b32.xlu1 %v106_v3, %s133_s25  ;;  %v113_v10 = vld [vmem:[%s197_s0 + $0x3] ss:$16 sm:%s77_s11]   ;;  %s138_s19 = smov 40   ;;  %s139_s20 = smov 24  }
   0xb   :  { %s91_s21 = smov 3  ;;  %s84_s22 = smov 3 }
   0xc   :  { %v115_v11 = vld [vmem:[%s197_s0 + $0x1] ss:$16 sm:%s91_s21]   ;;  %v114_v12 = vld [vmem:[%s197_s0 + $0x2] ss:$16 sm:%s84_s22]   ;;  %s140_s27 = smov 8   ;;  %s141_s28 = smov 16  }
   0xd   :  { %44 = vrot.lane.b32.xlu2 %v108_v6, %s135_s7  ;;  %s2_s29 = smov 3 }
   0xe   :  { %v3_v13 = vld [vmem:[%s197_s0] ss:$16 sm:%s2_s29]  }
   0xf   :  { %5 = vst.msk [vmem:[#allocation0] sm:$0x3] %vm4_vm0, %v3_v13  }
  0x12   :  { %51 = vrot.lane.b32.xlu0 %v109_v5, %s134_s6  ;;  %58 = vrot.lane.b32.xlu1 %v110_v7, %s136_s8 }
  0x15   :  { %65 = vrot.lane.b32.xlu2 %v111_v9, %s138_s19 }
  0x1a   :  { %72 = vrot.lane.b32.xlu0 %v112_v8, %s137_s18  ;;  %79 = vrot.lane.b32.xlu1 %v113_v10, %s139_s20 }
  0x1d   :  { %86 = vrot.lane.b32.xlu2 %v114_v12, %s141_s28 }
  0x22   :  { %93 = vrot.lane.b32.xlu0 %v115_v11, %s140_s27 }
  0x5f   :  { %v38_v14 = vpop.permute.xlu2 %37  }
  0x67   :  { %v45_v15 = vpop.permute.xlu2 %44  }
  0x6f   :  { %v66_v17 = vpop.permute.xlu2 %65  }
  0x74   :  { %v10_v16 = vpop.permute.xlu0 %9   ;;  %v24_v18 = vpop.permute.xlu1 %23  }
  0x75   :  { %12 = vst.msk [vmem:[#allocation0] sm:$0x3] %vm11_vm1, %v10_v16  }
  0x77   :  { %v87_v20 = vpop.permute.xlu2 %86  }
  0x7c   :  { %v17_v19 = vpop.permute.xlu0 %16   ;;  %v31_v21 = vpop.permute.xlu1 %30  }
  0x7d   :  { %19 = vst.msk [vmem:[#allocation0] sm:$0x3] %vm18_vm2, %v17_v19  }
  0x7e   :  { %26 = vst.msk [vmem:[#allocation0] sm:$0x3] %vm25_vm3, %v24_v18  }
  0x7f   :  { %33 = vst.msk [vmem:[#allocation0] sm:$0x3] %vm32_vm4, %v31_v21  }
  0x80   :  { %40 = vst.msk [vmem:[#allocation0] sm:$0x3] %vm39_vm5, %v38_v14  }
  0x81   :  { %47 = vst.msk [vmem:[#allocation0] sm:$0x3] %vm46_vm6, %v45_v15  }
  0x84   :  { %v52_v22 = vpop.permute.xlu0 %51   ;;  %v59_v23 = vpop.permute.xlu1 %58  }
  0x85   :  { %54 = vst.msk [vmem:[#allocation0] sm:$0x3] %vm53_vm7, %v52_v22  }
  0x86   :  { %61 = vst.msk [vmem:[#allocation0] sm:$0x3] %vm60_vm8, %v59_v23  }
  0x87   :  { %68 = vst.msk [vmem:[#allocation0] sm:$0x3] %vm67_vm9, %v66_v17  }
  0x8c   :  { %v73_v24 = vpop.permute.xlu0 %72   ;;  %v80_v25 = vpop.permute.xlu1 %79  }
  0x8d   :  { %75 = vst.msk [vmem:[#allocation0] sm:$0x3] %vm74_vm10, %v73_v24  }
  0x8e   :  { %82 = vst.msk [vmem:[#allocation0] sm:$0x3] %vm81_vm11, %v80_v25  }
  0x8f   :  { %89 = vst.msk [vmem:[#allocation0] sm:$0x3] %vm88_vm12, %v87_v20  }
  0x94   :  { %v94_v26 = vpop.permute.xlu0 %93  }
  0x95   :  { %96 = vst.msk [vmem:[#allocation0] sm:$0x3] %vm95_vm13, %v94_v26  }
  0x9c   :  { %v99_v27 = vld [vmem:[#allocation0] sm:$0x3] }
  0x9d   :  { %102 = vst [vmem:[%s198_s1] sm:$0x3] %v99_v27 }

// kernel: funky_conv_block.3
= control target key start
LH: loop header
LB: loop body
LE: loop exit
PB: predicated region body
PF: predicated region fallthrough
CT: control target
= control target key end

     0   :  { %s318_s12 = smov 0   ;;  %s335_s0 = inlined_call_operand.vmem [shape: bf16[2,14,128], index: 0, kind: input, shape index: {}]   ;;  %s336_s1 = inlined_call_operand.vmem [shape: f32[2,1,128], index: 1, kind: input, shape index: {}]   ;;  %s337_s2 = inlined_call_operand.vmem [shape: f32[1,1,128], index: 2, kind: input, shape index: {}]   ;;  %s338_s3 = inlined_call_operand.vmem [shape: f32[2,14,128], index: 3, kind: output, shape index: {}]  }
   0x1 LB: > { %s267_s13 = sadd.s32 4294967295, %s296_s12   ;;  %p271_p0 = scmp.ge.s32.totalorder %s296_s12, 1  ;;  %s296_s12 = sphi %s318_s12, %s13_s12  }
   0x2   : > { %p145_p1 = scmp.lt.s32.totalorder %s296_s12, 3 }
   0x4   : > { %p146_p2 = pnand %p271_p0, %p145_p1 }
   0x5   : > { %p172_p3 = scmp.lt.s32.totalorder (!%p146_p2), %s267_s13, 1 }
   0x6   : > { %149 = sbr.rel (%p146_p2) target bundleno = 23 (0x17), region = 32 }
   0xb   : > { %s340_s13 = smov (!%p172_p3, %s267_s13), 1  ;;  %v289_v4 = vld [vmem:[%s337_s2] ss:$0 sm:$0xff] }
   0xc   : > { %s278_s14 = sshll.u32 %s340_s13, 3  ;;  %s179_s17 = scalar_lea.vmem %s336_s1, %s340_s13 }
   0xd   : > { %s176_s20 = scalar_lea.vmem %s335_s0, %s278_s14  ;;  %v288_v0 = vld [vmem:[%s179_s17] ss:$0 sm:$0xff]  ;;  %s279_s21 = sshll.u32 %s340_s13, 4 }
   0xe   : > { %v186_v1 = vld [vmem:[%s176_s20] sm:$0xf]  ;;  %v187_v2 = vld [vmem:[%s176_s20 + $0x4] sm:$0x7]  ;;  %s184_s26 = scalar_lea.vmem %s338_s3, %s279_s21 }
   0xf   : > { %v188_v3 = vunpack.c.l.bf16 %v186_v1  ;;  %v189_v5 = vunpack.c.l.bf16 %v187_v2 }
  0x11   : > { %v194_v6 = vmul.f32 %v288_v0, %v188_v3  ;;  %v195_v7 = vmul.f32 %v288_v0, %v189_v5 }
  0x13   : > { %v199_v8 = vadd.f32 %v289_v4, %v194_v6  ;;  %v200_v9 = vadd.f32 %v289_v4, %v195_v7 }
  0x15   : > { %201 = vst [vmem:[%s184_s26] sm:$0xff] %v199_v8 }
  0x16   : > { %202 = vst [vmem:[%s184_s26 + $0x8] sm:$0x3f] %v200_v9 }
  0x17 PF: > { %s13_s12 = sadd.s32 1, %s296_s12  }
  0x18   : > { %p10_p4 = scmp.ge.s32.totalorder %s13_s12, 4  }
  0x1a   :  { %12 = sbr.rel (!%p10_p4) target bundleno = 1 (0x1), region = 65 }

// kernel: funky_conv_block.2
= control target key start
LH: loop header
LB: loop body
LE: loop exit
PB: predicated region body
PF: predicated region fallthrough
CT: control target
= control target key end

     0   :  { %s714_s18 = smov 0   ;;  %s832_s0 = inlined_call_operand.vmem [shape: bf16[2,16,64], index: 0, kind: input, shape index: {}]   ;;  %s833_s1 = inlined_call_operand.vmem [shape: bf16[3,64,128], index: 1, kind: input, shape index: {}]   ;;  %s834_s2 = inlined_call_operand.vmem [shape: f32[1,128], index: 2, kind: input, shape index: {}]   ;;  %s835_s3 = inlined_call_operand.vmem [shape: f32[128,128], index: 3, kind: input, shape index: {}]   ;;  %s836_s4 = inlined_call_operand.vmem [shape: bf16[2,14,128], index: 4, kind: output, shape index: {0}]   ;;  %s837_s5 = inlined_call_operand.vmem [shape: f32[2,2,128], index: 5, kind: output, shape index: {1}]  }
   0x1 LB: > { %s569_s19 = sadd.s32 4294967295, %s682_s18   ;;  %p573_p0 = scmp.ge.s32.totalorder %s682_s18, 1  ;;  %s682_s18 = sphi %s714_s18, %s16_s18  }
   0x2   : > { %p190_p1 = scmp.lt.s32.totalorder %s682_s18, 3 }
   0x4   : > { %p191_p2 = pnand %p573_p0, %p190_p1 }
   0x5   : > { %p222_p3 = scmp.lt.s32.totalorder (!%p191_p2), %s569_s19, 1 }
   0x6   : > { %194 = sbr.rel (%p191_p2) target bundleno = 329 (0x149), region = 36 }
   0xb   : > { %v658_v0 = vld [vmem:[%s833_s1 + $0x18] sm:$0xff]  ;;  %v657_v3 = vld [vmem:[%s833_s1 + $0x10] sm:$0xff]  ;;  %s839_s19 = smov (!%p222_p3, %s569_s19), 1  ;;  %v656_v6 = vld [vmem:[%s833_s1 + $0x8] sm:$0xff]  ;;  %vm293_vm0 = vcmask 523264   ;;  %vm362_vm1 = vcmask 1046528  }
   0xc   : > { %v662_v1 = vld [vmem:[%s833_s1 + $0x38] sm:$0xff]  ;;  %301 = vmatpush.bf16.msra.mxu0 %v658_v0  ;;  %v661_v4 = vld [vmem:[%s833_s1 + $0x30] sm:$0xff]  ;;  %v660_v7 = vld [vmem:[%s833_s1 + $0x28] sm:$0xff]  ;;  %s652_s13 = sshll.u32 %s839_s19, 3  ;;  %vm419_vm2 = vcmask 1045504   ;;  %vm460_vm5 = vcmask 1040384  }
   0xd   : > { %v666_v2 = vld [vmem:[%s833_s1 + $0x58] sm:$0xff]  ;;  %350 = vmatpush.bf16.msra.mxu1 %v662_v1  ;;  %v665_v5 = vld [vmem:[%s833_s1 + $0x50] sm:$0xff]  ;;  %v664_v8 = vld [vmem:[%s833_s1 + $0x48] sm:$0xff]  ;;  %s226_s22 = scalar_lea.vmem %s832_s0, %s652_s13  ;;  %s231_s15 = scalar_lea.vmem %s836_s4, %s652_s13 }
   0xe   : > { %407 = vmatpush.bf16.msra.mxu2 %v666_v2  ;;  %v655_v9 = vld [vmem:[%s833_s1] sm:$0xff]  ;;  %v253_v13 = vld [vmem:[%s835_s3 + $0x78] sm:$0xff]  ;;  %v252_v14 = vld [vmem:[%s835_s3 + $0x70] sm:$0xff]  ;;  %s578_s13 = sshll.u32 %s839_s19, 1 }
   0xf   : > { %v659_v10 = vld [vmem:[%s833_s1 + $0x20] sm:$0xff]  ;;  %462 = vmatpush.msra.mxu3 %v253_v13  ;;  %v251_v15 = vld [vmem:[%s835_s3 + $0x68] sm:$0xff]  ;;  %v249_v17 = vld [vmem:[%s835_s3 + $0x58] sm:$0xff]  ;;  %s235_s20 = scalar_lea.vmem %s837_s5, %s578_s13 }
  0x10   : > { %302 = vmatpush.bf16.msra.mxu0 %v657_v3  ;;  %v663_v11 = vld [vmem:[%s833_s1 + $0x40] sm:$0xff]  ;;  %v248_v18 = vld [vmem:[%s835_s3 + $0x50] sm:$0xff]  ;;  %v247_v19 = vld [vmem:[%s835_s3 + $0x48] sm:$0xff] }
  0x11   : > { %351 = vmatpush.bf16.msra.mxu1 %v661_v4  ;;  %v654_v12 = vld [vmem:[%s226_s22] sm:$0xff]  ;;  %463 = vmatpush.msra.mxu3 %v252_v14  ;;  %v245_v21 = vld [vmem:[%s835_s3 + $0x38] sm:$0xff]  ;;  %v244_v22 = vld [vmem:[%s835_s3 + $0x30] sm:$0xff] }
  0x12   : > { %408 = vmatpush.bf16.msra.mxu2 %v665_v5  ;;  %v250_v16 = vld [vmem:[%s835_s3 + $0x60] sm:$0xff]  ;;  %v243_v23 = vld [vmem:[%s835_s3 + $0x28] sm:$0xff]  ;;  %v241_v26 = vld [vmem:[%s835_s3 + $0x18] sm:$0xff] }
  0x13   : > { %464 = vmatpush.msra.mxu3 %v251_v15  ;;  %v246_v20 = vld [vmem:[%s835_s3 + $0x40] sm:$0xff]  ;;  %v240_v27 = vld [vmem:[%s835_s3 + $0x10] sm:$0xff]  ;;  %v239_v29 = vld [vmem:[%s835_s3 + $0x8] sm:$0xff] }
  0x14   : > { %303 = vmatpush.bf16.msra.mxu0 %v656_v6  ;;  %v242_v24 = vld [vmem:[%s835_s3 + $0x20] sm:$0xff] }
  0x15   : > { %352 = vmatpush.bf16.msra.mxu1 %v660_v7  ;;  %465 = vmatpush.msra.mxu3 %v250_v16  ;;  %v238_v31 = vld [vmem:[%s835_s3] sm:$0xff] }
  0x16   : > { %409 = vmatpush.bf16.msra.mxu2 %v664_v8  ;;  %v675_v41 = vld [vmem:[%s834_s2] ss:$0 sm:$0xff] }
  0x17   : > { %466 = vmatpush.msra.mxu3 %v249_v17 }
  0x18   : > { %304 = vmatpush.bf16.msra.mxu0 %v655_v9 }
  0x19   : > { %353 = vmatpush.bf16.msra.mxu1 %v659_v10  ;;  %467 = vmatpush.msra.mxu3 %v248_v18 }
  0x1a   : > { %410 = vmatpush.bf16.msra.mxu2 %v663_v11 }
  0x1b   : > { %599 = vmatmul.msk.bf16.vlgmr.msra.gmra.mxu0 %vm293_vm0, %v654_v12  ;;  %468 = vmatpush.msra.mxu3 %v247_v19 }
  0x1c   : > { %624 = vmatmul.msk.bf16.vlgmr.msra.gmra.mxu1 %vm293_vm0, %v654_v12 }
  0x1d   : > { %649 = vmatmul.msk.bf16.vlgmr.msra.gmra.mxu2 %vm293_vm0, %v654_v12  ;;  %469 = vmatpush.msra.mxu3 %v246_v20 }
  0x1f   : > { %470 = vmatpush.msra.mxu3 %v245_v21 }
  0x21   : > { %471 = vmatpush.msra.mxu3 %v244_v22 }
  0x23   : > { %472 = vmatpush.msra.mxu3 %v243_v23 }
  0x25   : > { %473 = vmatpush.msra.mxu3 %v242_v24 }
  0x27   : > { %474 = vmatpush.msra.mxu3 %v241_v26 }
  0x29   : > { %475 = vmatpush.msra.mxu3 %v240_v27 }
  0x2b   : > { %476 = vmatpush.msra.mxu3 %v239_v29 }
  0x2d   : > { %477 = vmatpush.msra.mxu3 %v238_v31 }
  0x98   : > { %v306_v28 = vpop.f32.mrf.mxu0 }
  0x99   : > { %v355_v25 = vpop.f32.mrf.mxu1 }
  0x9a   : > { %v363_v34 = vrot.slane %v355_v25, 1 }
  0xa0   : > { %v412_v30 = vpop.f32.mrf.mxu2  ;;  %v308_v36 = vpop.f32.mrf.mxu0 }
  0xa1   : > { %v357_v32 = vpop.f32.mrf.mxu1  ;;  %v420_v38 = vrot.slane %v412_v30, 2 }
  0xa2   : > { %v364_v33 = vrot.slane %v357_v32, 1 }
  0xa4   : > { %v365_v35 = vsel %vm362_vm1, %v363_v34, %v364_v33  ;;  %v369_v39 = vadd.f32 %v364_v33, %v308_v36 }
  0xa5   : > { %v368_v42 = vadd.f32 %v365_v35, %v306_v28 }
  0xa8   : > { %v414_v37 = vpop.f32.mrf.mxu2 }
  0xa9   : > { %v421_v40 = vrot.slane %v414_v37, 2 }
  0xab   : > { %v422_v43 = vsel %vm419_vm2, %v420_v38, %v421_v40  ;;  %v426_v44 = vadd.f32 %v421_v40, %v369_v39 }
  0xac   : > { %v425_v45 = vadd.f32 %v422_v43, %v368_v42 }
  0xad   : > { %v431_v46 = vadd.f32 %v675_v41, %v426_v44 }
  0xae   : > { %v430_v47 = vadd.f32 %v675_v41, %v425_v45 }
  0xaf   : > { %vm433_vm3 = vcmp.ge.f32.partialorder %v431_v46, 0.0  ;;  %v435_v48 = vmul.f32 0.1, %v431_v46 }
  0xb0   : > { %vm432_vm4 = vcmp.ge.f32.partialorder %v430_v47, 0.0  ;;  %v434_v49 = vmul.f32 0.1, %v430_v47 }
  0xb1   : > { %v437_v50 = vsel %vm433_vm3, %v431_v46, %v435_v48 }
  0xb2   : > { %v436_v51 = vsel %vm432_vm4, %v430_v47, %v434_v49  ;;  %v439_v52 = vpack.c.bf16 %v437_v50, %v437_v50  ;;  %v442_v53 = vsel %vm419_vm2, %v437_v50, 0.0  ;;  %v451_v54 = vmul.f32 %v437_v50, %v437_v50 }
  0xb3   : > { %v438_v55 = vpack.c.bf16 %v436_v51, %v436_v51  ;;  %v443_v56 = vadd.f32 %v442_v53, %v436_v51  ;;  %v450_v57 = vmul.f32 %v436_v51, %v436_v51 }
  0xb4   : > { %441 = vst [vmem:[%s231_s15 + $0x4] sm:$0x7] %v439_v52  ;;  %v452_v58 = vsel %vm419_vm2, %v451_v54, 0.0 }
  0xb5   : > { %440 = vst [vmem:[%s231_s15] sm:$0xf] %v438_v55  ;;  %v453_v59 = vadd.f32 %v452_v58, %v450_v57  ;;  %v444_v60 = vrot.slane %v443_v56, 4 }
  0xb7   : > { %v445_v61 = vadd.f32 %v444_v60, %v443_v56  ;;  %v454_v62 = vrot.slane %v453_v59, 4 }
  0xb9   : > { %v446_v63 = vrot.slane %v445_v61, 2  ;;  %v455_v0 = vadd.f32 %v454_v62, %v453_v59 }
  0xbb   : > { %v447_v1 = vadd.f32 %v446_v63, %v445_v61  ;;  %v456_v2 = vrot.slane %v455_v0, 2 }
  0xbd   : > { %v448_v3 = vrot.slane %v447_v1, 1  ;;  %v457_v4 = vadd.f32 %v456_v2, %v455_v0 }
  0xbf   : > { %v458_v5 = vrot.slane %v457_v4, 1  ;;  %v449_v6 = vadd.f32 %v448_v3, %v447_v1 }
  0xc1   : > { %v459_v7 = vadd.f32 %v458_v5, %v457_v4 }
  0xc3   : > { %v461_v8 = vsel %vm460_vm5, %v449_v6, %v459_v7 }
  0xc4   : > { %478 = vmatmul.f32.vlgmr.msra.gmra.mxu3 %v461_v8 }
 0x147   : > { %v479_v9 = vpop.f32.mrf.mxu3 }
 0x148   : > { %482 = vst [vmem:[%s235_s20] sm:$0x3] %v479_v9 }
 0x149 PF: > { %s16_s18 = sadd.s32 1, %s682_s18  }
 0x14a   : > { %p13_p4 = scmp.ge.s32.totalorder %s16_s18, 4  }
 0x14c   :  { %15 = sbr.rel (!%p13_p4) target bundleno = 1 (0x1), region = 80 }

</bundles_post_ra>
